<compile_context>
chip_gen: v6e
topology: v6e:2x2x1
jax: 0.10.0
libtpu: 0.0.40
codegen_flags: <defaults>
</compile_context>

<pallas_src>
import jax
import jax.numpy as jnp
from jax.experimental import pallas as pl
from jax.experimental.pallas import tpu as pltpu


def _round_up(n, m):
    return ((n + m - 1) // m) * m


def _valuenet_kernel(x_ref, a_ref, w1s_ref, w1a_ref, b1_ref, w2t_ref, b2_ref,
                     out_ref):
    # x_ref   : [TB, S]  bf16      a_ref   : [TB, A]  bf16
    # w1s_ref : [S, H]   bf16      w1a_ref : [A, H]   bf16
    # b1_ref  : [1, H]   f32
    # w2t_ref : [1, H]   f32       b2_ref  : [1, 1]   f32
    # out_ref : [TB, 1]  f32
    # fc1: fused concat -> two MXU matmuls, fp32 accumulate.
    h = jnp.dot(x_ref[...], w1s_ref[...], preferred_element_type=jnp.float32)
    h = h + jnp.dot(a_ref[...], w1a_ref[...], preferred_element_type=jnp.float32)
    h = jnp.maximum(h + b1_ref[...], 0.0)            # bias + ReLU on the VPU (f32)
    # fc2 with a single output column: VPU multiply + XLU lane reduction
    # instead of a lane-sparse 1-column MXU matmul.
    y = jnp.sum(h * w2t_ref[...], axis=-1, keepdims=True) + b2_ref[...]
    out_ref[...] = y.astype(out_ref.dtype)


def value_net_forward(x, a, params, *, tb=512):
    """x: [B, state_dim], a: [B, action_dim] -> [B, 1] (float32)."""
    w1, b1, w2, b2 = params["w1"], params["b1"], params["w2"], params["b2"]
    B, S = x.shape
    A = a.shape[1]
    H = w1.shape[1]

    # Batch tile: multiple of 16 (bf16 sublane packing), capped at `tb`.
    TB = min(tb, _round_up(B, 16))
    B_pad = _round_up(B, TB)
    if B_pad != B:
        x = jnp.pad(x, ((0, B_pad - B), (0, 0)))
        a = jnp.pad(a, ((0, B_pad - B), (0, 0)))

    # Split fc1 weights once in glue so the [B, S+A] concat never hits HBM.
    w1_s = w1[:S].astype(jnp.bfloat16)
    w1_a = w1[S:].astype(jnp.bfloat16)
    x_bf = x.astype(jnp.bfloat16)
    a_bf = a.astype(jnp.bfloat16)

    b1_2d = b1.reshape(1, H).astype(jnp.float32)
    w2_t = w2.reshape(1, H).astype(jnp.float32)      # lane-dense fc2 weight
    b2_2d = b2.reshape(1, 1).astype(jnp.float32)

    # TODO(synk): for realistic sizes (H >= 256), pad S/A/H to multiples of 128
    # once in glue for full lane occupancy; at these toy sizes it is negligible.

    out = pl.pallas_call(
        _valuenet_kernel,
        out_shape=jax.ShapeDtypeStruct((B_pad, 1), jnp.float32),
        grid_spec=pltpu.PrefetchScalarGridSpec(
            num_scalar_prefetch=0,
            grid=(B_pad // TB,),
            in_specs=[
                pl.BlockSpec((TB, S), lambda i: (i, 0)),   # x tile (pipelined)
                pl.BlockSpec((TB, A), lambda i: (i, 0)),   # a tile (pipelined)
                pl.BlockSpec((S, H), lambda i: (0, 0)),    # w1_s (VMEM resident)
                pl.BlockSpec((A, H), lambda i: (0, 0)),    # w1_a (VMEM resident)
                pl.BlockSpec((1, H), lambda i: (0, 0)),    # b1
                pl.BlockSpec((1, H), lambda i: (0, 0)),    # w2^T
                pl.BlockSpec((1, 1), lambda i: (0, 0)),    # b2
            ],
            out_specs=pl.BlockSpec((TB, 1), lambda i: (i, 0)),
        ),
        compiler_params=pltpu.CompilerParams(
            dimension_semantics=("parallel",),             # megacore on v7x
        ),
    )(x_bf, a_bf, w1_s, w1_a, b1_2d, w2_t, b2_2d)
    return out[:B]


def init_params(key, state_dim, hidden_dim, action_dim):
    """Deterministic init matching nn.Linear shapes (weights stored as [in, out])."""
    in1 = state_dim + action_dim
    k1, k2, k3, k4 = jax.random.split(key, 4)
    bound1 = 1.0 / jnp.sqrt(in1)
    bound2 = 1.0 / jnp.sqrt(hidden_dim)
    return {
        "w1": jax.random.uniform(k1, (in1, hidden_dim), jnp.float32, -bound1, bound1),
        "b1": jax.random.uniform(k2, (hidden_dim,), jnp.float32, -bound1, bound1),
        "w2": jax.random.uniform(k3, (hidden_dim, 1), jnp.float32, -bound2, bound2),
        "b2": jax.random.uniform(k4, (1,), jnp.float32, -bound2, bound2),
    }


def _reference(x, a, params):
    cat = jnp.concatenate([x, a], axis=1)
    h = jnp.maximum(cat @ params["w1"] + params["b1"], 0.0)
    return h @ params["w2"] + params["b2"]


if __name__ == "__main__":
    batch, state_dim, action_dim, hidden_dim = 8, 16, 8, 32

    key = jax.random.PRNGKey(0)
    kx, ka, kp = jax.random.split(key, 3)
    x = jax.random.normal(kx, (batch, state_dim), jnp.float32)
    a = jax.random.normal(ka, (batch, action_dim), jnp.float32)
    params = init_params(kp, state_dim, hidden_dim, action_dim)

    out = value_net_forward(x, a, params)
    out = jax.block_until_ready(out)

    ref = _reference(x, a, params)
    assert out.shape == (batch, 1)
    # bf16 inputs to the MXU (fp32 accumulate) -> loosen tolerance vs. fp32 ref.
    assert jnp.allclose(out, ref, atol=3e-2, rtol=3e-2), float(jnp.max(jnp.abs(out - ref)))

    print("KERNEL_OK")
</pallas_src>

<mosaic_0001>
module attributes {stable_mosaic.version = 11 : i64} {
  func.func @_valuenet_kernel(%arg0: i32, %arg1: memref<16x16xbf16, #tpu.memory_space<vmem>>, %arg2: memref<16x8xbf16, #tpu.memory_space<vmem>>, %arg3: memref<16x32xbf16, #tpu.memory_space<vmem>>, %arg4: memref<8x32xbf16, #tpu.memory_space<vmem>>, %arg5: memref<1x32xf32, #tpu.memory_space<vmem>>, %arg6: memref<1x32xf32, #tpu.memory_space<vmem>>, %arg7: memref<1x1xf32, #tpu.memory_space<vmem>>, %arg8: memref<16x1xf32, #tpu.memory_space<vmem>>) attributes {dimension_semantics = [#tpu.dimension_semantics<parallel>], iteration_bounds = array<i64: 1>, scalar_prefetch = 0 : i64, scratch_operands = 0 : i64, tpu.core_type = #tpu.core_type<tc>, window_params = [{transform_indices = @transform_0, window_bounds = array<i64: 16, 16>}, {transform_indices = @transform_1, window_bounds = array<i64: 16, 8>}, {pipeline_mode = #tpu.pipeline_mode<synchronous>, transform_indices = @transform_2, window_bounds = array<i64: 16, 32>}, {pipeline_mode = #tpu.pipeline_mode<synchronous>, transform_indices = @transform_3, window_bounds = array<i64: 8, 32>}, {pipeline_mode = #tpu.pipeline_mode<synchronous>, transform_indices = @transform_4, window_bounds = array<i64: 1, 32>}, {pipeline_mode = #tpu.pipeline_mode<synchronous>, transform_indices = @transform_5, window_bounds = array<i64: 1, 32>}, {pipeline_mode = #tpu.pipeline_mode<synchronous>, transform_indices = @transform_6, window_bounds = array<i64: 1, 1>}, {transform_indices = @transform_7, window_bounds = array<i64: 16, 1>}]} {
    %c0 = arith.constant 0 : index
    %c0_0 = arith.constant 0 : index
    %0 = vector.load %arg1[%c0, %c0_0] : memref<16x16xbf16, #tpu.memory_space<vmem>>, vector<16x16xbf16>
    %c0_1 = arith.constant 0 : index
    %c0_2 = arith.constant 0 : index
    %1 = vector.load %arg3[%c0_1, %c0_2] : memref<16x32xbf16, #tpu.memory_space<vmem>>, vector<16x32xbf16>
    %cst = arith.constant dense<0.000000e+00> : vector<16x32xf32>
    %2 = tpu.matmul %0, %1, %cst {dimension_numbers = #tpu.dot_dimension_numbers<[1], [0], [0], [1], [0, 0, 1, 1], [], []>} : vector<16x16xbf16>, vector<16x32xbf16>, vector<16x32xf32> -> vector<16x32xf32>
    %c0_3 = arith.constant 0 : index
    %c0_4 = arith.constant 0 : index
    %3 = vector.load %arg2[%c0_3, %c0_4] : memref<16x8xbf16, #tpu.memory_space<vmem>>, vector<16x8xbf16>
    %c0_5 = arith.constant 0 : index
    %c0_6 = arith.constant 0 : index
    %4 = vector.load %arg4[%c0_5, %c0_6] : memref<8x32xbf16, #tpu.memory_space<vmem>>, vector<8x32xbf16>
    %cst_7 = arith.constant dense<0.000000e+00> : vector<16x32xf32>
    %5 = tpu.matmul %3, %4, %cst_7 {dimension_numbers = #tpu.dot_dimension_numbers<[1], [0], [0], [1], [0, 0, 1, 1], [], []>} : vector<16x8xbf16>, vector<8x32xbf16>, vector<16x32xf32> -> vector<16x32xf32>
    %6 = arith.addf %2, %5 : vector<16x32xf32>
    %c0_8 = arith.constant 0 : index
    %c0_9 = arith.constant 0 : index
    %7 = vector.load %arg5[%c0_8, %c0_9] : memref<1x32xf32, #tpu.memory_space<vmem>>, vector<1x32xf32>
    %8 = vector.broadcast %7 : vector<1x32xf32> to vector<16x32xf32>
    %9 = arith.addf %6, %8 : vector<16x32xf32>
    %cst_10 = arith.constant 0.000000e+00 : f32
    %10 = vector.broadcast %cst_10 : f32 to vector<16x32xf32>
    %11 = arith.maximumf %9, %10 : vector<16x32xf32>
    %c0_11 = arith.constant 0 : index
    %c0_12 = arith.constant 0 : index
    %12 = vector.load %arg6[%c0_11, %c0_12] : memref<1x32xf32, #tpu.memory_space<vmem>>, vector<1x32xf32>
    %13 = vector.broadcast %12 : vector<1x32xf32> to vector<16x32xf32>
    %14 = arith.mulf %11, %13 : vector<16x32xf32>
    %cst_13 = arith.constant dense<0.000000e+00> : vector<16xf32>
    %15 = vector.multi_reduction <add>, %14, %cst_13 [1] : vector<16x32xf32> to vector<16xf32>
    %16 = vector.shape_cast %15 : vector<16xf32> to vector<16x1xf32>
    %c0_14 = arith.constant 0 : index
    %c0_15 = arith.constant 0 : index
    %17 = vector.load %arg7[%c0_14, %c0_15] : memref<1x1xf32, #tpu.memory_space<vmem>>, vector<1x1xf32>
    %18 = vector.broadcast %17 : vector<1x1xf32> to vector<16x1xf32>
    %19 = arith.addf %16, %18 : vector<16x1xf32>
    %c0_16 = arith.constant 0 : index
    %c0_17 = arith.constant 0 : index
    %20 = vector.load %arg8[%c0_16, %c0_17] : memref<16x1xf32, #tpu.memory_space<vmem>>, vector<16x1xf32>
    tpu.vector_store %arg8[%c0_16, %c0_17], %19 {strides = array<i32>} : memref<16x1xf32, #tpu.memory_space<vmem>>, vector<16x1xf32>,
    return
  }
  func.func @transform_0(%arg0: i32) -> (i32, i32) {
    %c0_i32 = arith.constant 0 : i32
    %c0_i32_0 = arith.constant 0 : i32
    return %arg0, %c0_i32 : i32, i32
  }
  func.func @transform_1(%arg0: i32) -> (i32, i32) {
    %c0_i32 = arith.constant 0 : i32
    %c0_i32_0 = arith.constant 0 : i32
    return %arg0, %c0_i32 : i32, i32
  }
  func.func @transform_2(%arg0: i32) -> (i32, i32) {
    %c0_i32 = arith.constant 0 : i32
    %c0_i32_0 = arith.constant 0 : i32
    %c0_i32_1 = arith.constant 0 : i32
    return %c0_i32, %c0_i32_0 : i32, i32
  }
  func.func @transform_3(%arg0: i32) -> (i32, i32) {
    %c0_i32 = arith.constant 0 : i32
    %c0_i32_0 = arith.constant 0 : i32
    %c0_i32_1 = arith.constant 0 : i32
    return %c0_i32, %c0_i32_0 : i32, i32
  }
  func.func @transform_4(%arg0: i32) -> (i32, i32) {
    %c0_i32 = arith.constant 0 : i32
    %c0_i32_0 = arith.constant 0 : i32
    %c0_i32_1 = arith.constant 0 : i32
    return %c0_i32, %c0_i32_0 : i32, i32
  }
  func.func @transform_5(%arg0: i32) -> (i32, i32) {
    %c0_i32 = arith.constant 0 : i32
    %c0_i32_0 = arith.constant 0 : i32
    %c0_i32_1 = arith.constant 0 : i32
    return %c0_i32, %c0_i32_0 : i32, i32
  }
  func.func @transform_6(%arg0: i32) -> (i32, i32) {
    %c0_i32 = arith.constant 0 : i32
    %c0_i32_0 = arith.constant 0 : i32
    %c0_i32_1 = arith.constant 0 : i32
    return %c0_i32, %c0_i32_0 : i32, i32
  }
  func.func @transform_7(%arg0: i32) -> (i32, i32) {
    %c0_i32 = arith.constant 0 : i32
    %c0_i32_0 = arith.constant 0 : i32
    return %arg0, %c0_i32 : i32, i32
  }
}

</mosaic_0001>

<bundles_post_ra>
// kernel: tpu_custom_call.1
= control target key start
LH: loop header
LB: loop body
LE: loop exit
PB: predicated region body
PF: predicated region fallthrough
CT: control target
= control target key end

     0   :  { %s324_s0 = inlined_call_operand.vmem [shape: bf16[16,16], index: 0, kind: input, shape index: {}]   ;;  %s325_s1 = inlined_call_operand.vmem [shape: bf16[16,8], index: 1, kind: input, shape index: {}]   ;;  %s326_s2 = inlined_call_operand.vmem [shape: bf16[16,32], index: 2, kind: input, shape index: {}]   ;;  %s327_s3 = inlined_call_operand.hbm [shape: bf16[8,32], index: 3, kind: input, shape index: {}]   ;;  %s328_s4 = inlined_call_operand.vmem [shape: f32[1,32], index: 4, kind: input, shape index: {}]   ;;  %s329_s5 = inlined_call_operand.vmem [shape: f32[1,32], index: 5, kind: input, shape index: {}]   ;;  %s330_s6 = inlined_call_operand.<no memory space> [shape: f32[1,1], index: 6, kind: input, shape index: {}]   ;;  %s331_s7 = inlined_call_operand.vmem [shape: f32[16,1], index: 7, kind: output, shape index: {}]  }
   0x1   :  { %v12_v0 = vstv %s330_s6 }
   0x2   :  { %13 = vst [vmem:[#allocation2] sm:$0x1] %v12_v0 }
   0x3   :  { %14 = vsyncpa [#allocation4], 0  ;;  %s254_s26 = smov [#allocation3]  }
   0x4   :  { %s27_s27 = sshll.u32 %s254_s26, 4  ;;  %s28_s27 = int_to_ptr.vmem [resolvable:$true] %s27_s27 }
   0x5   :  { %s240_s28 = scalar_lea.vmem %s28_s27, 64  ;;  %p245_p1 = scmp.lt.s32.totalorder %s28_s27, %s28_s27 }
   0x6   :  { %p241_p0 = scmp.ne.s32.totalorder %s28_s27, %s240_s28  ;;  %p246_p2 = scmp.lt.s32.totalorder %s240_s28, %s240_s28 }
   0x8   :  { %p247_p3 = por %p246_p2, %p245_p1 }
   0xa   :  { %p248_p4 = pnand %p247_p3, %p241_p0 }
   0xc   :  { %251 = shalt.err (!%p248_p4)
}
   0xd   :  { %30 = dma.hbm_to_vmem [thread:$0]  %s327_s3, 64, %s28_s27, [#allocation4]  }
   0xe   :  { %252 = dma.done.wait [#allocation4], 64  }
   0xf   :  { %253 = vsyncadd [#allocation4], 4294967232  ;;  %v255_v1 = vmov 0.0   ;;  %vm256_vm0 = vmmov 0   ;;  %vm57_vm1 = vcmask 1043456   ;;  %v229_v4 = vld [vmem:[%s326_s2] sm:$0xff]  }
  0x10   :  { %214 = vmatprep.subr.bf16.mxu0 %v255_v1  ;;  %220 = vmatprep.subr.bf16.mxu1 %v255_v1  ;;  %v47_v2 = vld [vmem:[#allocation3] sm:$0xf]  ;;  %vm53_vm2 = vcmask 64512   ;;  %vm113_vm3 = vcmask 130048   ;;  %v207_v9 = vld [vmem:[%s328_s4] ss:$0 sm:$0xff] }
  0x11   :  { %216 = vmatprep.mubr.msk.bf16.mxu0 %vm256_vm0, %v255_v1  ;;  %222 = vmatprep.mubr.msk.bf16.mxu1 %vm256_vm0, %v255_v1  ;;  %v59_v3 = vsel %vm57_vm1, %v47_v2, 0  ;;  %v230_v5 = vld [vmem:[%s325_s1] sm:$0xff]   ;;  %vm178_vm4 = vcmask 261120   ;;  %vm194_vm5 = vcmask 7168  }
  0x12   :  { %215 = vmatpush3.bf16.msra.mxu0 %v59_v3  ;;  %221 = vmatpush3.bf16.msra.mxu1 %v229_v4  ;;  %v231_v6 = vld [vmem:[%s324_s0] sm:$0xff]  }
  0x13   :  { %v208_v16 = vld [vmem:[%s329_s5] ss:$0 sm:$0xff] }
  0x14   :  { %v209_v27 = vld [vmem:[#allocation2] ss:$0 sm:$0xff] }
  0x15   :  { %217 = vmatmul.mubr.msk.bf16.vlgmr.msra.gmra.mxu0 %vm53_vm2, %v230_v5  ;;  %223 = vmatmul.mubr.msk.bf16.vlgmr.msra.gmra.mxu1 %vm113_vm3, %v231_v6 }
  0xd5   :  { %v95_v7 = vpop.f32.mrf.mxu0  ;;  %v151_v8 = vpop.f32.mrf.mxu1 }
  0xd6   :  { %v152_v10 = vadd.f32 %v151_v8, %v95_v7 }
  0xd7   :  { %v218_v11 = vpop.f32.mrf.mxu0  ;;  %v224_v12 = vpop.f32.mrf.mxu1 }
  0xd8   :  { %v165_v13 = vadd.f32 %v207_v9, %v152_v10 }
  0xd9   :  { %v98_v14 = vpop.f32.mrf.mxu0  ;;  %v154_v15 = vpop.f32.mrf.mxu1 }
  0xda   :  { %v167_v17 = vmax.f32 %v165_v13, 0.0  ;;  %v155_v18 = vadd.f32 %v154_v15, %v98_v14 }
  0xdb   :  { %v219_v19 = vpop.f32.mrf.mxu0  ;;  %v225_v20 = vpop.f32.mrf.mxu1 }
  0xdc   :  { %v166_v21 = vadd.f32 %v207_v9, %v155_v18  ;;  %v176_v22 = vmul.f32 %v208_v16, %v167_v17 }
  0xde   :  { %v168_v23 = vmax.f32 %v166_v21, 0.0  ;;  %v179_v24 = vsel %vm178_vm4, %v176_v22, 0.0 }
  0xdf   :  { %180 = vadd.xlane.f32.xlu0 %v179_v24 }
  0xe0   :  { %v177_v25 = vmul.f32 %v208_v16, %v168_v23 }
  0xe2   :  { %v182_v26 = vsel %vm178_vm4, %v177_v25, 0.0 }
  0xe3   :  { %183 = vadd.xlane.f32.xlu0 %v182_v26 }
 0x168   :  { %v181_v28 = vpop.xlane.xlu0 %180 }
 0x169   :  { %v192_v29 = vadd.f32 %v209_v27, %v181_v28 }
 0x16b   :  { %195 = vst.msk [vmem:[%s331_s7] sm:$0xff] %vm194_vm5, %v192_v29 }
 0x16c   :  { %v184_v30 = vpop.xlane.xlu0 %183 }
 0x16d   :  { %v193_v31 = vadd.f32 %v209_v27, %v184_v30 }
 0x16f   :  { %196 = vst.msk [vmem:[%s331_s7 + $0x8] sm:$0xff] %vm194_vm5, %v193_v31 }
 0x170   :  { %201 = vsyncpa [#allocation4], 1 }

</bundles_post_ra>
